<compile_context>
chip_gen: v6e
topology: v6e:2x2x1
jax: 0.10.0
libtpu: 0.0.40
codegen_flags: <defaults>
</compile_context>

<pallas_src>
import math

import jax
import jax.numpy as jnp
from jax.experimental import pallas as pl
from jax.experimental.pallas import tpu as pltpu

_LANE = 128  # last dim maps to the 128-lane vreg axis


def _hint_loss_kernel(fs_ref, ft_ref, out_ref):
    # Compute in the input dtype to match torch's MSELoss(reduction='none').
    diff = fs_ref[...] - ft_ref[...]
    out_ref[...] = diff * diff


def _vmem_capacity_bytes():
    try:
        return int(pltpu.get_tpu_info().vmem_capacity_bytes)
    except Exception:
        return 128 << 20  # conservative default (v5e / v6e)


def _pick_tile_rows(rows, itemsize, target_buffer_bytes, tile_rows=None):
    """Row tile: ~target bytes per input buffer, >= 4 blocks when there's work."""
    # dtype-packed sublane multiple: 8 for f32, 16 for bf16/f16, 32 for int8/fp8
    sub = max(8, 32 // itemsize)
    if tile_rows is None:
        tile_rows = max(sub, target_buffer_bytes // (_LANE * itemsize))
    tr = max(sub, tile_rows - (tile_rows % sub))
    if rows > 8 * sub:
        # Clamp so the grid has at least ~4 blocks: keeps the BlockSpec
        # pipeline overlapping DMA/compute and lets v7x split across 2 TCs.
        cap = pl.cdiv(rows, 4)
        cap = max(sub, (cap // sub) * sub)
        tr = min(tr, cap)
    return int(min(tr, rows))


def hint_loss(f_s, f_t, *, tile_rows=None):
    """Elementwise squared error, identical to nn.MSELoss(reduction='none')(f_s, f_t)."""
    assert f_s.shape == f_t.shape and f_s.dtype == f_t.dtype
    orig_shape = f_s.shape
    total = math.prod(orig_shape) if orig_shape else 1
    itemsize = jnp.dtype(f_s.dtype).itemsize

    # Non-lane-aligned or tiny inputs: a single fused jnp expression already
    # hits roofline for this trivially fusable op and avoids any wrapper
    # slice/pad/concat copies (which would triple HBM traffic).
    if total == 0 or total % _LANE != 0 or total < 8 * _LANE:
        return jnp.square(f_s - f_t)

    rows = total // _LANE
    fs2d = jnp.ravel(f_s).reshape(rows, _LANE)  # zero-copy reshape
    ft2d = jnp.ravel(f_t).reshape(rows, _LANE)

    vmem_cap = _vmem_capacity_bytes()
    # v7x (64 MiB VMEM, ~3.2 TB/s): bigger tiles amortize per-step overhead.
    target_buffer_bytes = (4 << 20) if vmem_cap <= (64 << 20) else (2 << 20)

    tr = _pick_tile_rows(rows, itemsize, target_buffer_bytes, tile_rows)
    grid = (pl.cdiv(rows, tr),)  # ragged final block masked by Pallas

    tile_bytes = tr * _LANE * itemsize
    # 2 inputs + 1 output, double-buffered, plus headroom; never request more
    # than ~48 MiB (leaves compiler-internal headroom even on v7x's 64 MiB).
    vmem_limit = int(min(max(6 * tile_bytes + (4 << 20), 16 << 20),
                         48 << 20, (vmem_cap * 3) // 4))

    out2d = pl.pallas_call(
        _hint_loss_kernel,
        out_shape=jax.ShapeDtypeStruct((rows, _LANE), f_s.dtype),
        grid_spec=pltpu.PrefetchScalarGridSpec(
            num_scalar_prefetch=0,
            grid=grid,
            in_specs=[
                pl.BlockSpec((tr, _LANE), lambda i: (i, 0)),
                pl.BlockSpec((tr, _LANE), lambda i: (i, 0)),
            ],
            out_specs=pl.BlockSpec((tr, _LANE), lambda i: (i, 0)),
        ),
        compiler_params=pltpu.CompilerParams(
            dimension_semantics=("parallel",),
            vmem_limit_bytes=vmem_limit,
        ),
        cost_estimate=pl.CostEstimate(
            flops=2 * total,
            transcendentals=0,
            bytes_accessed=3 * total * itemsize,
        ),
    )(fs2d, ft2d)

    return out2d.reshape(orig_shape)


if __name__ == "__main__":
    key = jax.random.PRNGKey(0)
    k1, k2 = jax.random.split(key)

    # NCHW feature maps, as the PyTorch module expects (student / teacher features).
    x_shape = (2, 4, 16, 16)
    f_s = jax.random.normal(k1, x_shape, dtype=jnp.float32)
    f_t = jax.random.normal(k2, x_shape, dtype=jnp.float32)

    loss = jax.block_until_ready(hint_loss(f_s, f_t))
    ref = (f_s - f_t) ** 2
    assert loss.shape == x_shape and loss.dtype == f_s.dtype
    assert jnp.allclose(loss, ref, atol=1e-6, rtol=1e-6)

    # Multi-block path (rows=256 -> grid of 4 tiles, exercises pipelining clamp).
    y_shape = (4, 8, 32, 32)
    g_s = jax.random.normal(k1, y_shape, dtype=jnp.float32)
    g_t = jax.random.normal(k2, y_shape, dtype=jnp.float32)
    loss2 = jax.block_until_ready(hint_loss(g_s, g_t))
    assert loss2.shape == y_shape
    assert jnp.allclose(loss2, (g_s - g_t) ** 2, atol=1e-6, rtol=1e-6)

    # Non-multiple-of-128 element count: routed to the fused jnp path (no copies).
    z_shape = (2, 3, 5, 7)
    h_s = jax.random.normal(k1, z_shape, dtype=jnp.float32)
    h_t = jax.random.normal(k2, z_shape, dtype=jnp.float32)
    loss3 = jax.block_until_ready(hint_loss(h_s, h_t))
    assert loss3.shape == z_shape
    assert jnp.allclose(loss3, (h_s - h_t) ** 2, atol=1e-6, rtol=1e-6)

    # bf16 path (16-row packed sublane multiple).
    b_s = f_s.astype(jnp.bfloat16)
    b_t = f_t.astype(jnp.bfloat16)
    loss4 = jax.block_until_ready(hint_loss(b_s, b_t))
    assert loss4.dtype == jnp.bfloat16 and loss4.shape == x_shape
    assert jnp.allclose(loss4.astype(jnp.float32),
                        ((b_s - b_t) ** 2).astype(jnp.float32),
                        atol=1e-2, rtol=1e-2)

    print("KERNEL_OK")
</pallas_src>

<mosaic_0001>
module attributes {stable_mosaic.version = 11 : i64} {
  func.func @_hint_loss_kernel(%arg0: i32, %arg1: memref<16x128xf32, #tpu.memory_space<vmem>>, %arg2: memref<16x128xf32, #tpu.memory_space<vmem>>, %arg3: memref<16x128xf32, #tpu.memory_space<vmem>>) attributes {dimension_semantics = [#tpu.dimension_semantics<parallel>], iteration_bounds = array<i64: 1>, scalar_prefetch = 0 : i64, scratch_operands = 0 : i64, tpu.core_type = #tpu.core_type<tc>, window_params = [{transform_indices = @transform_0, window_bounds = array<i64: 16, 128>}, {transform_indices = @transform_1, window_bounds = array<i64: 16, 128>}, {transform_indices = @transform_2, window_bounds = array<i64: 16, 128>}]} {
    %c0 = arith.constant 0 : index
    %c0_0 = arith.constant 0 : index
    %0 = vector.load %arg1[%c0, %c0_0] : memref<16x128xf32, #tpu.memory_space<vmem>>, vector<16x128xf32>
    %c0_1 = arith.constant 0 : index
    %c0_2 = arith.constant 0 : index
    %1 = vector.load %arg2[%c0_1, %c0_2] : memref<16x128xf32, #tpu.memory_space<vmem>>, vector<16x128xf32>
    %2 = arith.subf %0, %1 : vector<16x128xf32>
    %3 = arith.mulf %2, %2 : vector<16x128xf32>
    %c0_3 = arith.constant 0 : index
    %c0_4 = arith.constant 0 : index
    %4 = vector.load %arg3[%c0_3, %c0_4] : memref<16x128xf32, #tpu.memory_space<vmem>>, vector<16x128xf32>
    tpu.vector_store %arg3[%c0_3, %c0_4], %3 {strides = array<i32>} : memref<16x128xf32, #tpu.memory_space<vmem>>, vector<16x128xf32>,
    return
  }
  func.func @transform_0(%arg0: i32) -> (i32, i32) {
    %c0_i32 = arith.constant 0 : i32
    %c0_i32_0 = arith.constant 0 : i32
    return %arg0, %c0_i32 : i32, i32
  }
  func.func @transform_1(%arg0: i32) -> (i32, i32) {
    %c0_i32 = arith.constant 0 : i32
    %c0_i32_0 = arith.constant 0 : i32
    return %arg0, %c0_i32 : i32, i32
  }
  func.func @transform_2(%arg0: i32) -> (i32, i32) {
    %c0_i32 = arith.constant 0 : i32
    %c0_i32_0 = arith.constant 0 : i32
    return %arg0, %c0_i32 : i32, i32
  }
}

</mosaic_0001>

<bundles_post_ra>
// kernel: tpu_custom_call.1
= control target key start
LH: loop header
LB: loop body
LE: loop exit
PB: predicated region body
PF: predicated region fallthrough
CT: control target
= control target key end

     0   :  { %7 = vsyncpa [#allocation3], 0  ;;  %s177_s0 = inlined_call_operand.hbm [shape: f32[16,128], index: 0, kind: input, shape index: {}]   ;;  %s178_s1 = inlined_call_operand.hbm [shape: f32[16,128], index: 1, kind: input, shape index: {}]   ;;  %s179_s2 = inlined_call_operand.hbm [shape: f32[16,128], index: 2, kind: output, shape index: {}]  }
   0x1   :  { %8 = vsyncpa [#allocation6], 0 }
   0x2   :  { %9 = vsyncpa [#allocation4], 0  ;;  %s139_s9 = smov [#allocation2]  }
   0x3   :  { %s15_s10 = sshll.u32 %s139_s9, 4  ;;  %s16_s10 = int_to_ptr.vmem [resolvable:$true] %s15_s10 }
   0x4   :  { %s81_s11 = scalar_lea.vmem %s16_s10, 256  ;;  %p86_p1 = scmp.lt.s32.totalorder %s16_s10, %s16_s10 }
   0x5   :  { %p82_p0 = scmp.ne.s32.totalorder %s16_s10, %s81_s11  ;;  %p87_p2 = scmp.lt.s32.totalorder %s81_s11, %s81_s11 }
   0x7   :  { %p88_p3 = por %p87_p2, %p86_p1 }
   0x9   :  { %p89_p4 = pnand %p88_p3, %p82_p0 }
   0xb   :  { %92 = shalt.err (!%p89_p4)
}
   0xc   :  { %s140_s12 = smov 128   ;;  %s141_s13 = smov 8  }
   0xd   :  { %21 = dma.hbm_to_vmem [thread:$0]  %s177_s0, 256, %s16_s10, [#allocation3], %s140_s12, %s140_s12, %s141_s13  }
   0xe   :  { %s142_s16 = smov [#allocation5]  }
   0xf   :  { %s27_s17 = sshll.u32 %s142_s16, 4  ;;  %s28_s17 = int_to_ptr.vmem [resolvable:$true] %s27_s17 }
  0x10   :  { %s101_s18 = scalar_lea.vmem %s28_s17, 256  ;;  %p106_p6 = scmp.lt.s32.totalorder %s28_s17, %s28_s17 }
  0x11   :  { %p102_p5 = scmp.ne.s32.totalorder %s28_s17, %s101_s18  ;;  %p107_p7 = scmp.lt.s32.totalorder %s101_s18, %s101_s18 }
  0x13   :  { %p108_p8 = por %p107_p7, %p106_p6 }
  0x15   :  { %p109_p9 = pnand %p108_p8, %p102_p5 }
  0x17   :  { %112 = shalt.err (!%p109_p9)
}
  0x18   :  { %33 = dma.hbm_to_vmem [thread:$0]  %s178_s1, 256, %s28_s17, [#allocation6], %s140_s12, %s140_s12, %s141_s13  }
  0x19   :  { %133 = dma.done.wait [#allocation3], 256  }
  0x1a   :  { %134 = vsyncadd [#allocation3], 4294967040 }
  0x1b   :  { %135 = dma.done.wait [#allocation6], 256  }
  0x1c   :  { %136 = vsyncadd [#allocation6], 4294967040  ;;  %v40_v0 = vld [vmem:[#allocation2] sm:$0xff]  ;;  %v42_v1 = vld [vmem:[#allocation5] sm:$0xff]  ;;  %s143_s0 = smov [#allocation7]  }
  0x1d   :  { %v41_v2 = vld [vmem:[#allocation2 + $0x8] sm:$0xff]  ;;  %v44_v3 = vsub.f32 %v40_v0, %v42_v1  ;;  %v43_v4 = vld [vmem:[#allocation5 + $0x8] sm:$0xff]  ;;  %s55_s21 = sshll.u32 %s143_s0, 4  ;;  %s56_s21 = int_to_ptr.vmem [resolvable:$true] %s55_s21 }
  0x1e   :  { %v45_v5 = vsub.f32 %v41_v2, %v43_v4  ;;  %s113_s22 = scalar_lea.vmem %s56_s21, 256  ;;  %p118_p11 = scmp.lt.s32.totalorder %s56_s21, %s56_s21 }
  0x1f   :  { %v46_v6 = vmul.f32 %v44_v3, %v44_v3  ;;  %p114_p10 = scmp.ne.s32.totalorder %s56_s21, %s113_s22  ;;  %p119_p12 = scmp.lt.s32.totalorder %s113_s22, %s113_s22 }
  0x20   :  { %v47_v7 = vmul.f32 %v45_v5, %v45_v5 }
  0x21   :  { %48 = vst [vmem:[#allocation7] sm:$0xff] %v46_v6  ;;  %p120_p13 = por %p119_p12, %p118_p11 }
  0x22   :  { %49 = vst [vmem:[#allocation7 + $0x8] sm:$0xff] %v47_v7 }
  0x23   :  { %p121_p0 = pnand %p120_p13, %p114_p10 }
  0x25   :  { %124 = shalt.err (!%p121_p0)
}
  0x26   :  { %61 = dma.vmem_to_hbm [thread:$0]  %s56_s21, 256, %s179_s2, [#allocation4], %s140_s12, %s140_s12, %s141_s13  }
  0x27   :  { %137 = dma.done.wait [#allocation4], 256  }
  0x28   :  { %138 = vsyncadd [#allocation4], 4294967040 }
  0x29   :  { %65 = vsyncpa [#allocation3], 1 }
  0x2a   :  { %66 = vsyncpa [#allocation6], 1 }
  0x2b   :  { %67 = vsyncpa [#allocation4], 1 }

</bundles_post_ra>
